<compile_context>
chip_gen: v5e
topology: v5e:2x2
jax: 0.10.0
libtpu: 0.0.40
codegen_flags: <defaults>
</compile_context>

<pallas_src>
import functools

import jax
import jax.numpy as jnp
import numpy as np
from jax.experimental import pallas as pl
from jax.experimental.pallas import tpu as pltpu


def _cgmm_fused_kernel(xt_ref, s_ref, w_ref, acc_ref, *, C, G, L):
    """One edge tile: per-edge unnormalized posterior + node scatter-accumulate.

    xt_ref : (2*C*G + L, TE) f32   rows = [h^T | b^T | onehot(pos)^T], edges on lanes
    s_ref  : (TE, N)         bf16  one-hot edge->dst scatter (exact 0/1)
    w_ref  : (C*G, L*C*G)    f32   block transition matrix (Q folded with delta(g,g'))
    acc_ref: (C*G, N)        f32   resident node accumulator (nodes on lanes)
    """
    CG = C * G

    @pl.when(pl.program_id(1) == 0)
    def _init():
        acc_ref[...] = jnp.zeros_like(acc_ref)

    xt = xt_ref[...]                            # (2*CG+L, TE)
    h_t = xt[0:CG, :]                           # (CG, TE)  h[e, c_l, g]
    b_t = xt[CG:2 * CG, :]                      # (CG, TE)  B[c_i, x[dst_e], g]
    p_t = xt[2 * CG:2 * CG + L, :]              # (L,  TE)  one-hot positional label

    # hp_t[l*CG + c_l*G + g, e] = P[e, l] * h[e, c_l, g]   -> MXU K = L*C*G
    hp_t = jnp.concatenate([p_t[l:l + 1, :] * h_t for l in range(L)], axis=0)

    # qh_t[c_i*G + g, e] = sum_{c_l} Q[c_i, c_l, pos_e, g] * h[e, c_l, g]
    qh_t = jnp.dot(w_ref[...], hp_t, preferred_element_type=jnp.float32)  # (CG, TE)

    # Unnormalized posterior already summed over the neighbour state c_l.
    ucg_t = b_t * qh_t                                                    # (CG, TE)

    # Lane-dense scatter over destination nodes on the MXU: (CG,TE) @ (TE,N).
    s = s_ref[...].astype(jnp.float32)
    acc_ref[...] += jnp.dot(ucg_t, s, preferred_element_type=jnp.float32)


def positional_cgmm_forward(x, prev_h, edge_index, pos, Q_neigh, B,
                            *, edge_tile=512, num_splits=2, interpret=False):
    """Forward pass of PositionalCGMMLayer (eval mode).

    x:          (N,)   int   node labels in [0, M)
    prev_h:     (N, C, n_gen) float32 previous layer posteriors
    edge_index: (2, E) int   row0 = destination node, row1 = source/neighbor
    pos:        (E,)   int   positional label in [0, L)
    Q_neigh:    (C, C, L, n_gen) raw params
    B:          (C, M, n_gen)    raw params
    Returns (log_likelihood (N, n_gen), posterior_i (N, C, n_gen)).
    """
    C, _, L, G = Q_neigh.shape
    M = B.shape[1]
    N = prev_h.shape[0]
    E = edge_index.shape[1]
    CG = C * G

    sm_Q = jax.nn.softmax(Q_neigh, axis=0)       # softmax over current state
    sm_B = jax.nn.softmax(B, axis=1)             # softmax over emission symbol

    dst = edge_index[0]
    src = edge_index[1]

    # Transposed per-edge streams (edges on the lane axis), concatenated into a
    # single operand so each grid step is one DMA.  The one-hot position rows
    # cost only L extra lanes of the same stream.
    h_t = prev_h.astype(jnp.float32).reshape(N, CG)[src].T                    # (CG, E)
    b_t = jnp.transpose(sm_B, (0, 2, 1)).reshape(CG, M)[:, x[dst]].astype(jnp.float32)
    p_t = (jnp.arange(L)[:, None] == pos[None, :]).astype(jnp.float32)        # (L, E)
    xt = jnp.concatenate([h_t, b_t, p_t], axis=0)                             # (2CG+L, E)

    # Block transition matrix:
    #   W[c_i*G + g', l*CG + c_l*G + g] = sm_Q[c_i, c_l, l, g] * delta(g, g')
    smQ_r = jnp.transpose(sm_Q, (0, 2, 1, 3)).astype(jnp.float32)             # (c_i,l,c_l,g)
    eye_g = jnp.eye(G, dtype=jnp.float32)
    W = (smQ_r[:, None, :, :, :] * eye_g[None, :, None, None, :]).reshape(CG, L * CG)

    # One-hot edge->dst scatter.  bf16: 0/1 exact, half the DMA of f32.
    S = (dst[:, None] == jnp.arange(N)[None, :]).astype(jnp.bfloat16)         # (E, N)

    counts = jax.ops.segment_sum(jnp.ones((E,), jnp.float32), dst, num_segments=N)
    inv_counts = 1.0 / jnp.maximum(counts, 1.0)                               # (N,)

    # Pad the edge axis to a multiple of (edge_tile * num_splits); padded columns
    # have h = b = 0 -> zero contribution, and padded S rows are zero.
    TE = edge_tile
    chunk = TE * num_splits
    E_pad = ((E + chunk - 1) // chunk) * chunk
    pad = E_pad - E
    if pad:
        xt = jnp.pad(xt, ((0, 0), (0, pad)))
        S = jnp.pad(S, ((0, pad), (0, 0)))

    steps = E_pad // chunk
    grid = (num_splits, steps)                   # (parallel split, edge tiles)

    cparams = pltpu.CompilerParams(
        # leading axis shards across TensorCores on multi-TC chips (v7x);
        # trailing axis is the node-accumulation (reduction) axis.
        dimension_semantics=("parallel", "arbitrary"),
        vmem_limit_bytes=48 * 1024 * 1024,       # fits v7x's 64 MiB with headroom
    )

    acc = pl.pallas_call(
        functools.partial(_cgmm_fused_kernel, C=C, G=G, L=L),
        out_shape=jax.ShapeDtypeStruct((num_splits, CG, N), jnp.float32),
        grid=grid,
        in_specs=[
            pl.BlockSpec((2 * CG + L, TE), lambda p, i: (0, p * steps + i)),
            pl.BlockSpec((TE, N), lambda p, i: (p * steps + i, 0)),
            pl.BlockSpec((CG, L * CG), lambda p, i: (0, 0)),
        ],
        out_specs=pl.BlockSpec((None, CG, N), lambda p, i: (p, 0, 0)),
        compiler_params=cparams,
        interpret=interpret,
    )(xt, S, W)

    # Tiny O(N*C*G) epilogue: combine split accumulators, per-node mean,
    # log-likelihood, and posterior normalization (hoisted out of the edge loop).
    acc = acc.sum(axis=0).reshape(C, G, N)                    # (C, G, N)
    lik_mean = acc.sum(axis=0) * inv_counts[None, :]          # (G, N); 0 -> -inf log
    loglik = jnp.log(lik_mean).T                              # (N, G)
    post_i = jnp.transpose(acc / (lik_mean[None, :, :] + 1e-16), (2, 0, 1))  # (N, C, G)
    return loglik, post_i


def reference_forward(x, prev_h, edge_index, pos, Q_neigh, B):
    """Pure-JAX reference mirroring the PyTorch forward (eval mode)."""
    C, _, L, G = Q_neigh.shape
    N = prev_h.shape[0]
    sm_Q = jax.nn.softmax(Q_neigh, axis=0)
    sm_B = jax.nn.softmax(B, axis=1)
    dst, src = edge_index[0], edge_index[1]
    q_e = jnp.transpose(sm_Q[:, :, pos, :], (2, 0, 1, 3))      # (E, C, C, G)
    b_e = jnp.transpose(sm_B[:, x[dst], :], (1, 0, 2))         # (E, C, G)
    h_e = prev_h[src]                                          # (E, C, G)
    unnorm = b_e[:, :, None, :] * q_e * h_e[:, None, :, :]     # (E, C, C, G)
    edge_lik = unnorm.sum(axis=(1, 2))                         # (E, G)
    lik_sum = jax.ops.segment_sum(edge_lik, dst, num_segments=N)
    counts = jax.ops.segment_sum(jnp.ones((edge_lik.shape[0], 1), jnp.float32),
                                 dst, num_segments=N)
    lik_mean = lik_sum / jnp.maximum(counts, 1.0)              # (N, G)
    post_il = unnorm / (lik_mean[dst][:, None, None, :] + 1e-16)
    post_i = jax.ops.segment_sum(post_il.sum(axis=2), dst, num_segments=N)
    return jnp.log(lik_mean), post_i


if __name__ == "__main__":
    # module hyper-parameters (small, consistent with the forward semantics)
    n_gen, C, L, M = 4, 4, 3, 5
    N, E = 16, 256  # nodes, edges

    key = jax.random.PRNGKey(0)
    k1, k2, k3, k4 = jax.random.split(key, 4)

    # deterministic parameter init: normal_(std=2.5), same shapes as nn.Parameter
    Q_neigh = 2.5 * jax.random.normal(k1, (C, C, L, n_gen), dtype=jnp.float32)
    Bparam = 2.5 * jax.random.normal(k2, (C, M, n_gen), dtype=jnp.float32)

    # inputs
    x = jax.random.randint(k3, (N,), 0, M, dtype=jnp.int32)           # node labels
    prev_h = jax.nn.softmax(
        jax.random.normal(k4, (N, C, n_gen), dtype=jnp.float32), axis=1)

    dst = jnp.arange(E, dtype=jnp.int32) % N          # every node has >=1 incoming edge
    src = (jnp.arange(E, dtype=jnp.int32) * 3 + 1) % N
    edge_index = jnp.stack([dst, src], axis=0)        # (2, E)
    pos = jnp.arange(E, dtype=jnp.int32) % L          # positional labels

    loglik, post_i = jax.block_until_ready(
        positional_cgmm_forward(x, prev_h, edge_index, pos, Q_neigh, Bparam))

    ref_loglik, ref_post_i = jax.block_until_ready(
        reference_forward(x, prev_h, edge_index, pos, Q_neigh, Bparam))

    np.testing.assert_allclose(np.asarray(loglik), np.asarray(ref_loglik),
                               rtol=2e-4, atol=1e-5)
    np.testing.assert_allclose(np.asarray(post_i), np.asarray(ref_post_i),
                               rtol=2e-4, atol=1e-5)

    print("KERNEL_OK")
</pallas_src>

<mosaic_0001>
module attributes {stable_mosaic.version = 11 : i64} {
  func.func @_cgmm_fused_kernel(%arg0: i32, %arg1: i32, %arg2: memref<35x512xf32, #tpu.memory_space<vmem>>, %arg3: memref<512x16xbf16, #tpu.memory_space<vmem>>, %arg4: memref<16x48xf32, #tpu.memory_space<vmem>>, %arg5: memref<1x16x16xf32, #tpu.memory_space<vmem>>) attributes {dimension_semantics = [#tpu.dimension_semantics<parallel>, #tpu.dimension_semantics<arbitrary>], iteration_bounds = array<i64: 2, 1>, scalar_prefetch = 0 : i64, scratch_operands = 0 : i64, tpu.core_type = #tpu.core_type<tc>, window_params = [{transform_indices = @transform_0, window_bounds = array<i64: 35, 512>}, {transform_indices = @transform_1, window_bounds = array<i64: 512, 16>}, {pipeline_mode = #tpu.pipeline_mode<synchronous>, transform_indices = @transform_2, window_bounds = array<i64: 16, 48>}, {transform_indices = @transform_3, window_bounds = array<i64: 1, 16, 16>}]} {
    %c0_i32 = arith.constant 0 : i32
    %0 = arith.cmpi eq, %arg1, %c0_i32 : i32
    %1 = arith.extui %0 : i1 to i32
    %c0_i32_0 = arith.constant 0 : i32
    %2 = arith.cmpi ne, %1, %c0_i32_0 : i32
    scf.if %2 {
      %cst_13 = arith.constant 0.000000e+00 : f32
      %29 = vector.broadcast %cst_13 : f32 to vector<16x16xf32>
      %c0_14 = arith.constant 0 : index
      %c0_15 = arith.constant 0 : index
      %c0_16 = arith.constant 0 : index
      %30 = vector.load %arg5[%c0_14, %c0_15, %c0_16] : memref<1x16x16xf32, #tpu.memory_space<vmem>>, vector<1x16x16xf32>
      %31 = vector.shape_cast %30 : vector<1x16x16xf32> to vector<16x16xf32>
      %32 = vector.shape_cast %29 : vector<16x16xf32> to vector<1x16x16xf32>
      tpu.vector_store %arg5[%c0_14, %c0_15, %c0_16], %32 {strides = array<i32>} : memref<1x16x16xf32, #tpu.memory_space<vmem>>, vector<1x16x16xf32>,
    } else {
    }
    %c0 = arith.constant 0 : index
    %c0_1 = arith.constant 0 : index
    %3 = vector.load %arg2[%c0, %c0_1] : memref<35x512xf32, #tpu.memory_space<vmem>>, vector<35x512xf32>
    %4 = vector.extract_strided_slice %3 {offsets = [0, 0], sizes = [16, 512], strides = [1, 1]} : vector<35x512xf32> to vector<16x512xf32>
    %5 = vector.extract_strided_slice %3 {offsets = [16, 0], sizes = [16, 512], strides = [1, 1]} : vector<35x512xf32> to vector<16x512xf32>
    %6 = vector.extract_strided_slice %3 {offsets = [32, 0], sizes = [3, 512], strides = [1, 1]} : vector<35x512xf32> to vector<3x512xf32>
    %7 = vector.extract_strided_slice %6 {offsets = [0, 0], sizes = [1, 512], strides = [1, 1]} : vector<3x512xf32> to vector<1x512xf32>
    %8 = vector.broadcast %7 : vector<1x512xf32> to vector<16x512xf32>
    %9 = arith.mulf %8, %4 : vector<16x512xf32>
    %10 = vector.extract_strided_slice %6 {offsets = [1, 0], sizes = [1, 512], strides = [1, 1]} : vector<3x512xf32> to vector<1x512xf32>
    %11 = vector.broadcast %10 : vector<1x512xf32> to vector<16x512xf32>
    %12 = arith.mulf %11, %4 : vector<16x512xf32>
    %13 = vector.extract_strided_slice %6 {offsets = [2, 0], sizes = [1, 512], strides = [1, 1]} : vector<3x512xf32> to vector<1x512xf32>
    %14 = vector.broadcast %13 : vector<1x512xf32> to vector<16x512xf32>
    %15 = arith.mulf %14, %4 : vector<16x512xf32>
    %16 = tpu.concatenate %9, %12, %15 in 0 : vector<16x512xf32>, vector<16x512xf32>, vector<16x512xf32> -> vector<48x512xf32>
    %c0_2 = arith.constant 0 : index
    %c0_3 = arith.constant 0 : index
    %17 = vector.load %arg4[%c0_2, %c0_3] : memref<16x48xf32, #tpu.memory_space<vmem>>, vector<16x48xf32>
    %cst = arith.constant dense<0.000000e+00> : vector<16x512xf32>
    %18 = tpu.matmul %17, %16, %cst {dimension_numbers = #tpu.dot_dimension_numbers<[1], [0], [0], [1], [0, 0, 1, 1], [], []>} : vector<16x48xf32>, vector<48x512xf32>, vector<16x512xf32> -> vector<16x512xf32>
    %19 = arith.mulf %5, %18 : vector<16x512xf32>
    %c0_4 = arith.constant 0 : index
    %c0_5 = arith.constant 0 : index
    %20 = vector.load %arg3[%c0_4, %c0_5] : memref<512x16xbf16, #tpu.memory_space<vmem>>, vector<512x16xbf16>
    %21 = arith.extf %20 : vector<512x16xbf16> to vector<512x16xf32>
    %c0_6 = arith.constant 0 : index
    %c0_7 = arith.constant 0 : index
    %c0_8 = arith.constant 0 : index
    %22 = vector.load %arg5[%c0_6, %c0_7, %c0_8] : memref<1x16x16xf32, #tpu.memory_space<vmem>>, vector<1x16x16xf32>
    %23 = vector.shape_cast %22 : vector<1x16x16xf32> to vector<16x16xf32>
    %cst_9 = arith.constant dense<0.000000e+00> : vector<16x16xf32>
    %24 = tpu.matmul %19, %21, %cst_9 {dimension_numbers = #tpu.dot_dimension_numbers<[1], [0], [0], [1], [0, 0, 1, 1], [], []>} : vector<16x512xf32>, vector<512x16xf32>, vector<16x16xf32> -> vector<16x16xf32>
    %25 = arith.addf %23, %24 : vector<16x16xf32>
    %c0_10 = arith.constant 0 : index
    %c0_11 = arith.constant 0 : index
    %c0_12 = arith.constant 0 : index
    %26 = vector.load %arg5[%c0_10, %c0_11, %c0_12] : memref<1x16x16xf32, #tpu.memory_space<vmem>>, vector<1x16x16xf32>
    %27 = vector.shape_cast %26 : vector<1x16x16xf32> to vector<16x16xf32>
    %28 = vector.shape_cast %25 : vector<16x16xf32> to vector<1x16x16xf32>
    tpu.vector_store %arg5[%c0_10, %c0_11, %c0_12], %28 {strides = array<i32>} : memref<1x16x16xf32, #tpu.memory_space<vmem>>, vector<1x16x16xf32>,
    return
  }
  func.func @transform_0(%arg0: i32, %arg1: i32) -> (i32, i32) {
    %c1_i32 = arith.constant 1 : i32
    %0 = arith.muli %arg0, %c1_i32 : i32
    %1 = arith.addi %0, %arg1 : i32
    %c0_i32 = arith.constant 0 : i32
    %c0_i32_0 = arith.constant 0 : i32
    return %c0_i32, %1 : i32, i32
  }
  func.func @transform_1(%arg0: i32, %arg1: i32) -> (i32, i32) {
    %c1_i32 = arith.constant 1 : i32
    %0 = arith.muli %arg0, %c1_i32 : i32
    %1 = arith.addi %0, %arg1 : i32
    %c0_i32 = arith.constant 0 : i32
    %c0_i32_0 = arith.constant 0 : i32
    return %1, %c0_i32 : i32, i32
  }
  func.func @transform_2(%arg0: i32, %arg1: i32) -> (i32, i32) {
    %c0_i32 = arith.constant 0 : i32
    %c0_i32_0 = arith.constant 0 : i32
    %c0_i32_1 = arith.constant 0 : i32
    return %c0_i32, %c0_i32_0 : i32, i32
  }
  func.func @transform_3(%arg0: i32, %arg1: i32) -> (i32, i32, i32) {
    %c0_i32 = arith.constant 0 : i32
    %c0_i32_0 = arith.constant 0 : i32
    %c0_i32_1 = arith.constant 0 : i32
    return %arg0, %c0_i32, %c0_i32_0 : i32, i32, i32
  }
}

</mosaic_0001>

<bundles_post_ra>
// kernel: tpu_custom_call.1
= control target key start
LH: loop header
LB: loop body
LE: loop exit
PB: predicated region body
PF: predicated region fallthrough
CT: control target
= control target key end

     0   :  { %8 = vsyncpa [#allocation4], 0  ;;  %s1366_s0 = inlined_call_operand.vmem [shape: f32[35,1024], index: 0, kind: input, shape index: {}]   ;;  %s1367_s1 = inlined_call_operand.vmem [shape: bf16[1024,16], index: 1, kind: input, shape index: {}]   ;;  %s1368_s2 = inlined_call_operand.vmem [shape: f32[16,48], index: 2, kind: input, shape index: {}]   ;;  %s1369_s3 = inlined_call_operand.hbm [shape: f32[2,16,16], index: 3, kind: output, shape index: {}]  }
   0x1   :  { %10 = vsyncpa [#allocation4 + $0x1], 0  ;;  %s1124_s12 = smov 0   ;;  %s1126_s13 = smov 0  }
   0x2   :  { %s1128_s14 = smov 0   ;;  %s1130_s15 = smov 0  }
   0x3   :  { %s1132_s16 = smov 0   ;;  %s1134_s17 = smov 0  }
   0x4 LB: > { %s777_s18 = sadd.s32 4294967295, %s1099_s17   ;;  %s778_s19 = sadd.s32 4294967294, %s1099_s17   ;;  %s1099_s17 = sphi %s1134_s17, %s16_s17   ;;  %s1095_s16 = sphi %s1132_s16, %s1376_s16   ;;  %s1091_s15 = sphi %s1130_s15, %s1375_s15   ;;  %s1087_s14 = sphi %s1128_s14, %s1374_s14   ;;  %s1083_s13 = sphi %s1126_s13, %s1373_s13   ;;  %s1079_s12 = sphi %s1124_s12, %s1372_s12  }
   0x5   : > { %s28_s20 = sadd.s32 1, %s1095_s16  ;;  %s37_s21 = sadd.s32 1, %s1087_s14 }
   0x6   : > { %p30_p0 = scmp.ge.s32.totalorder %s28_s20, 2  ;;  %p44_p1 = scmp.ne.s32.totalorder %s1087_s14, %s1083_s13 }
   0x7   : > { %p45_p2 = scmp.eq.s32.totalorder %s1099_s17, 0  ;;  %p123_p3 = scmp.eq.s32.totalorder %s777_s18, 1 }
   0x8   : > { %s1378_s20 = smov (%p30_p0, %s28_s20), 0  ;;  %p128_p6 = scmp.ne.s32.totalorder %s1083_s13, %s1079_s12 }
   0x9   : > { %p46_p4 = por %p45_p2, %p44_p1  ;;  %p1163_p5 = por %p123_p3, %p44_p1 }
   0xa   : > { %s34_s23 = ssub.s32 %s1095_s16, %s1378_s20  ;;  %p129_p8 = scmp.eq.s32.totalorder %s778_s19, 1 }
   0xb   : > { %p35_p7 = scmp.eq.s32.totalorder %s34_s23, 0  ;;  %p780_p10 = scmp.ge.s32.totalorder %s1099_s17, 2 }
   0xc   : > { %p1174_p9 = por %p129_p8, %p128_p6 }
   0xd   : > { %s1172_s24 = scalar_select %p35_p7, %s1087_s14, %s37_s21  }
   0xe   : > { %148 = sbr.rel (%p780_p10) target bundleno = 43 (0x2b), region = 20 }
  0x13   : > { %151 = sbr.rel (!%p46_p4) target bundleno = 43 (0x2b), region = 24  ;;  %s153_s26 = sand.u32 (%p46_p4), 1, %s1087_s14  }
  0x14   : > { %s800_s27 = sshll.u32 (%p46_p4), %s1095_s16, 5  ;;  %s961_s28 = smul.u32 (%p46_p4), 160, %s153_s26 }
  0x15   : > { %s1186_s4 = scalar_lea.vmem (%p46_p4), %s1366_s0, %s800_s27 }
  0x16   : > { %v172_v0 = vld [vmem:[%s1186_s4] sm:$0xff] (%p46_p4)  ;;  %v174_v1 = vld [vmem:[%s1186_s4 + $0x8] sm:$0xff] (%p46_p4)  ;;  %v176_v2 = vld [vmem:[%s1186_s4 + $0x10] sm:$0xff] (%p46_p4)  ;;  %s1191_s5 = scalar_lea.vmem (%p46_p4), [#allocation2], %s961_s28 }
  0x17   : > { %173 = vst [vmem:[%s1191_s5] sm:$0xff] (%p46_p4), %v172_v0  ;;  %v178_v3 = vld [vmem:[%s1186_s4 + $0x18] sm:$0xff] (%p46_p4)  ;;  %v180_v4 = vld [vmem:[%s1186_s4 + $0x40] sm:$0xff] (%p46_p4)  ;;  %v182_v5 = vld [vmem:[%s1186_s4 + $0x48] sm:$0xff] (%p46_p4) }
  0x18   : > { %175 = vst [vmem:[%s1191_s5 + $0x8] sm:$0xff] %v174_v1  ;;  %v184_v6 = vld [vmem:[%s1186_s4 + $0x50] sm:$0xff]  ;;  %v186_v7 = vld [vmem:[%s1186_s4 + $0x58] sm:$0xff]  ;;  %v188_v8 = vld [vmem:[%s1186_s4 + $0x80] sm:$0xff] }
  0x19   : > { %177 = vst [vmem:[%s1191_s5 + $0x10] sm:$0xff] %v176_v2  ;;  %v190_v9 = vld [vmem:[%s1186_s4 + $0x88] sm:$0xff]  ;;  %v192_v10 = vld [vmem:[%s1186_s4 + $0x90] sm:$0xff]  ;;  %v194_v11 = vld [vmem:[%s1186_s4 + $0x98] sm:$0xff] }
  0x1a   : > { %179 = vst [vmem:[%s1191_s5 + $0x18] sm:$0xff] %v178_v3  ;;  %v196_v12 = vld [vmem:[%s1186_s4 + $0xc0] sm:$0xff]  ;;  %v198_v13 = vld [vmem:[%s1186_s4 + $0xc8] sm:$0xff]  ;;  %v200_v14 = vld [vmem:[%s1186_s4 + $0xd0] sm:$0xff] }
  0x1b   : > { %181 = vst [vmem:[%s1191_s5 + $0x20] sm:$0xff] %v180_v4  ;;  %v202_v15 = vld [vmem:[%s1186_s4 + $0xd8] sm:$0xff]  ;;  %v204_v16 = vld [vmem:[%s1186_s4 + $0x100] sm:$0xff]  ;;  %v206_v17 = vld [vmem:[%s1186_s4 + $0x108] sm:$0xff] }
  0x1c   : > { %183 = vst [vmem:[%s1191_s5 + $0x28] sm:$0xff] %v182_v5  ;;  %v208_v18 = vld [vmem:[%s1186_s4 + $0x110] sm:$0xff]  ;;  %v210_v19 = vld [vmem:[%s1186_s4 + $0x118] sm:$0xff] }
  0x1d   : > { %185 = vst [vmem:[%s1191_s5 + $0x30] sm:$0xff] %v184_v6 }
  0x1e   : > { %187 = vst [vmem:[%s1191_s5 + $0x38] sm:$0xff] %v186_v7 }
  0x1f   : > { %189 = vst [vmem:[%s1191_s5 + $0x40] sm:$0xff] %v188_v8 }
  0x20   : > { %191 = vst [vmem:[%s1191_s5 + $0x48] sm:$0xff] %v190_v9 }
  0x21   : > { %193 = vst [vmem:[%s1191_s5 + $0x50] sm:$0xff] %v192_v10 }
  0x22   : > { %195 = vst [vmem:[%s1191_s5 + $0x58] sm:$0xff] %v194_v11 }
  0x23   : > { %197 = vst [vmem:[%s1191_s5 + $0x60] sm:$0xff] %v196_v12 }
  0x24   : > { %199 = vst [vmem:[%s1191_s5 + $0x68] sm:$0xff] %v198_v13 }
  0x25   : > { %201 = vst [vmem:[%s1191_s5 + $0x70] sm:$0xff] %v200_v14 }
  0x26   : > { %203 = vst [vmem:[%s1191_s5 + $0x78] sm:$0xff] %v202_v15 }
  0x27   : > { %205 = vst [vmem:[%s1191_s5 + $0x80] sm:$0xff] %v204_v16 }
  0x28   : > { %207 = vst [vmem:[%s1191_s5 + $0x88] sm:$0xff] %v206_v17 }
  0x29   : > { %209 = vst [vmem:[%s1191_s5 + $0x90] sm:$0xff] %v208_v18 }
  0x2a   : > { %211 = vst [vmem:[%s1191_s5 + $0x98] sm:$0xff] %v210_v19 }
  0x2b PF: > { %p783_p11 = scmp.ge.s32.totalorder %s1099_s17, 1  ;;  %p227_p12 = scmp.lt.s32.totalorder %s1099_s17, 3 }
  0x2d   : > { %p228_p13 = pnand %p783_p11, %p227_p12 }
  0x2e   : > { %s1233_s6 = sand.u32 (!%p228_p13), 1, %s1083_s13   ;;  %s785_s7 = sshll.u32 (!%p228_p13), %s1091_s15, 6 }
  0x2f   : > { %231 = sbr.rel (%p228_p13) target bundleno = 353 (0x161), region = 51  ;;  %p267_p0 = scmp.lt.s32.totalorder (!%p228_p13), %s785_s7, 127 }
  0x30   : > { %s962_s8 = smul.u32 (!%p228_p13), 160, %s1233_s6  ;;  %s784_s28 = sshll.u32 (!%p228_p13), %s1233_s6, 4 }
  0x31   : > { %s262_s29 = scalar_lea.vmem (!%p228_p13), [#allocation3], %s784_s28  ;;  %s801_s30 = sshll.u32 (!%p228_p13), %s1091_s15, 4 }
  0x32   : > { %s1237_s9 = scalar_lea.vmem (!%p228_p13), [#allocation2], %s962_s8  ;;  %s685_s8 = sshll.u32 (!%p228_p13), %s262_s29, 4  ;;  %s686_s8 = int_to_ptr.vmem [resolvable:$true] %s685_s8 }
  0x33   : > { %s673_s15 = scalar_lea.sflag (!%p228_p13), [#allocation4], %s1233_s6  ;;  %s1041_s21 = scalar_lea.hbm (!%p228_p13), %s1369_s3, 32 }
  0x34   : > { %v286_v20 = vld [vmem:[%s1237_s9 + $0x30] sm:$0xff]  ;;  %s1380_s7 = smov (!%p267_p0, %s785_s7), 127  ;;  %v287_v24 = vld [vmem:[%s1237_s9 + $0x38] sm:$0xff]  ;;  %v1248_v30 = vld [vmem:[%s1237_s9 + $0x80] sm:$0x7]  ;;  %vm338_vm0 = vcmask 392192  }
  0x35   : > { %v298_v21 = vld [vmem:[%s1237_s9 + $0x90] sm:$0x7]  ;;  %v299_v25 = vld [vmem:[%s1237_s9 + $0x98] sm:$0x7]  ;;  %v1251_v33 = vld [vmem:[%s1237_s9 + $0x88] sm:$0x7] }
  0x36   : > { %v282_v22 = vld [vmem:[%s1237_s9 + $0x10] sm:$0xff]  ;;  %v326_v23 = vperm.slane %v298_v21, 2  ;;  %v314_v26 = vperm.slane %v298_v21, 1  ;;  %v283_v27 = vld [vmem:[%s1237_s9 + $0x18] sm:$0xff]  ;;  %v327_v28 = vperm.slane %v299_v25, 2  ;;  %v315_v29 = vperm.slane %v299_v25, 1 }
  0x37   : > { %v284_v36 = vld [vmem:[%s1237_s9 + $0x20] sm:$0xff]  ;;  %v285_v37 = vld [vmem:[%s1237_s9 + $0x28] sm:$0xff]  ;;  %v302_v40 = vperm.slane %v298_v21, 0  ;;  %v324_v41 = vperm.slane %v1248_v30, 2  ;;  %v325_v42 = vperm.slane %v1251_v33, 2  ;;  %s786_s10 = sshll.u32 %s1380_s7, 2  ;;  %s684_s7 = scalar_lea.hbm %s1369_s3, %s801_s30 }
  0x38   : > { %v334_v31 = vmul.f32 %v326_v23, %v286_v20  ;;  %v330_v32 = vmul.f32 %v326_v23, %v282_v22  ;;  %v335_v34 = vmul.f32 %v327_v28, %v287_v24  ;;  %v331_v35 = vmul.f32 %v327_v28, %v283_v27  ;;  %v280_v38 = vld [vmem:[%s1237_s9] sm:$0xff]  ;;  %v281_v43 = vld [vmem:[%s1237_s9 + $0x8] sm:$0xff]  ;;  %s1265_s19 = scalar_lea.vmem %s1367_s1, %s786_s10 }
  0x39   : > { %v322_v39 = vmul.f32 %v314_v26, %v286_v20  ;;  %v323_v44 = vmul.f32 %v315_v29, %v287_v24  ;;  %v303_v45 = vperm.slane %v299_v25, 0  ;;  %v312_v46 = vperm.slane %v1248_v30, 1  ;;  %v952_v62 = vld [vmem:[%s1265_s19 + $0xb8] sm:$0xff]   ;;  %v336_v1 = vld [vmem:[%s1368_s2] sm:$0xff]  ;;  %v951_v11 = vld [vmem:[%s1265_s19 + $0xb0] sm:$0xff]  }
  0x3a   : > { %401 = vmatpush.msra.mxu2 %v334_v31  ;;  %424 = vmatpush.msra.mxu3 %v335_v34  ;;  %v313_v47 = vperm.slane %v1251_v33, 1  ;;  %v318_v48 = vmul.f32 %v314_v26, %v282_v22  ;;  %v332_v49 = vmul.f32 %v324_v41, %v284_v36  ;;  %v333_v50 = vmul.f32 %v325_v42, %v285_v37  ;;  %v960_v0 = vld [vmem:[%s1265_s19 + $0xf8] sm:$0xff]   ;;  %v959_v17 = vld [vmem:[%s1265_s19 + $0xf0] sm:$0xff]   ;;  %v337_v19 = vld [vmem:[%s1368_s2 + $0x8] sm:$0xff] }
  0x3b   : > { %v328_v51 = vmul.f32 %v324_v41, %v280_v38  ;;  %v319_v52 = vmul.f32 %v315_v29, %v283_v27  ;;  %v329_v53 = vmul.f32 %v325_v42, %v281_v43  ;;  %v310_v54 = vmul.f32 %v302_v40, %v286_v20  ;;  %v936_v7 = vld [vmem:[%s1265_s19 + $0x38] sm:$0xff]   ;;  %v935_v18 = vld [vmem:[%s1265_s19 + $0x30] sm:$0xff]   ;;  %v934_v31 = vld [vmem:[%s1265_s19 + $0x28] sm:$0xff]  }
  0x3c   : > { %402 = vmatpush.msra.mxu2 %v330_v32  ;;  %425 = vmatpush.msra.mxu3 %v331_v35  ;;  %v320_v55 = vmul.f32 %v312_v46, %v284_v36  ;;  %v311_v56 = vmul.f32 %v303_v45, %v287_v24  ;;  %v321_v57 = vmul.f32 %v313_v47, %v285_v37  ;;  %v300_v58 = vperm.slane %v1248_v30, 0  ;;  %v944_v10 = vld [vmem:[%s1265_s19 + $0x78] sm:$0xff]   ;;  %v943_v21 = vld [vmem:[%s1265_s19 + $0x70] sm:$0xff]   ;;  %v958_v30 = vld [vmem:[%s1265_s19 + $0xe8] sm:$0xff]  }
  0x3d   : > { %355 = vmatpush.msra.mxu0 %v332_v49  ;;  %378 = vmatpush.msra.mxu1 %v333_v50  ;;  %v306_v59 = vmul.f32 %v302_v40, %v282_v22  ;;  %v316_v60 = vmul.f32 %v312_v46, %v280_v38  ;;  %v301_v61 = vperm.slane %v1251_v33, 0  ;;  %v307_v63 = vmul.f32 %v303_v45, %v283_v27  ;;  %v950_v22 = vld [vmem:[%s1265_s19 + $0xa8] sm:$0xff]   ;;  %v949_v34 = vld [vmem:[%s1265_s19 + $0xa0] sm:$0xff]   ;;  %v948_v46 = vld [vmem:[%s1265_s19 + $0x98] sm:$0xff]  }
  0x3e   : > { %403 = vmatpush.msra.mxu2 %v322_v39  ;;  %426 = vmatpush.msra.mxu3 %v323_v44  ;;  %v317_v2 = vmul.f32 %v313_v47, %v281_v43  ;;  %v308_v3 = vmul.f32 %v300_v58, %v284_v36  ;;  %v897_v4 = vunpack.c.h.bf16 %v952_v62  ;;  %v929_v6 = vunpack.c.h.bf16 %v960_v0  ;;  %v942_v33 = vld [vmem:[%s1265_s19 + $0x68] sm:$0xff]   ;;  %v957_v41 = vld [vmem:[%s1265_s19 + $0xe0] sm:$0xff]  }
  0x3f   : > { %356 = vmatpush.msra.mxu0 %v328_v51  ;;  %379 = vmatpush.msra.mxu1 %v329_v53  ;;  %v309_v5 = vmul.f32 %v301_v61, %v285_v37  ;;  %v304_v8 = vmul.f32 %v300_v58, %v280_v38  ;;  %v896_v9 = vunpack.c.l.bf16 %v952_v62  ;;  %v305_v12 = vmul.f32 %v301_v61, %v281_v43  ;;  %v933_v42 = vld [vmem:[%s1265_s19 + $0x20] sm:$0xff]   ;;  %v956_v53 = vld [vmem:[%s1265_s19 + $0xd8] sm:$0xff]   ;;  %v947_v58 = vld [vmem:[%s1265_s19 + $0x90] sm:$0xff]  }
  0x40   : > { %404 = vmatpush.msra.mxu2 %v318_v48  ;;  %427 = vmatpush.msra.mxu3 %v319_v52  ;;  %v833_v13 = vunpack.c.h.bf16 %v936_v7  ;;  %v865_v14 = vunpack.c.h.bf16 %v944_v10  ;;  %v893_v15 = vunpack.c.h.bf16 %v951_v11  ;;  %v928_v16 = vunpack.c.l.bf16 %v960_v0  ;;  %v941_v45 = vld [vmem:[%s1265_s19 + $0x60] sm:$0xff]  }
  0x41   : > { %357 = vmatpush.msra.mxu0 %v320_v55  ;;  %380 = vmatpush.msra.mxu1 %v321_v57  ;;  %v832_v20 = vunpack.c.l.bf16 %v936_v7  ;;  %v864_v23 = vunpack.c.l.bf16 %v944_v10  ;;  %v892_v24 = vunpack.c.l.bf16 %v951_v11  ;;  %v925_v25 = vunpack.c.h.bf16 %v959_v17  ;;  %v940_v57 = vld [vmem:[%s1265_s19 + $0x58] sm:$0xff]  }
  0x42   : > { %405 = vmatpush.msra.mxu2 %v310_v54  ;;  %428 = vmatpush.msra.mxu3 %v311_v56  ;;  %v829_v26 = vunpack.c.h.bf16 %v935_v18  ;;  %v861_v27 = vunpack.c.h.bf16 %v943_v21  ;;  %v889_v28 = vunpack.c.h.bf16 %v950_v22  ;;  %v924_v29 = vunpack.c.l.bf16 %v959_v17  ;;  %v932_v54 = vld [vmem:[%s1265_s19 + $0x18] sm:$0xff]  }
  0x43   : > { %358 = vmatpush.msra.mxu0 %v316_v60  ;;  %381 = vmatpush.msra.mxu1 %v317_v2  ;;  %v828_v32 = vunpack.c.l.bf16 %v935_v18  ;;  %v860_v35 = vunpack.c.l.bf16 %v943_v21  ;;  %v888_v36 = vunpack.c.l.bf16 %v950_v22  ;;  %v921_v37 = vunpack.c.h.bf16 %v958_v30  ;;  %v931_v2 = vld [vmem:[%s1265_s19 + $0x10] sm:$0xff]   ;;  %v945_v21 = vld [vmem:[%s1265_s19 + $0x80] sm:$0xff]  }
  0x44   : > { %406 = vmatpush.msra.mxu2 %v306_v59  ;;  %429 = vmatpush.msra.mxu3 %v307_v63  ;;  %v825_v38 = vunpack.c.h.bf16 %v934_v31  ;;  %v857_v39 = vunpack.c.h.bf16 %v942_v33  ;;  %v885_v40 = vunpack.c.h.bf16 %v949_v34  ;;  %v920_v43 = vunpack.c.l.bf16 %v958_v30 }
  0x45   : > { %791 = vmatmul.msk.f32.vlgmr.msra.gmra.mxu2 %vm338_vm0, %v336_v1  ;;  %793 = vmatmul.msk.f32.vlgmr.msra.gmra.mxu3 %vm338_vm0, %v336_v1  ;;  %v824_v44 = vunpack.c.l.bf16 %v934_v31  ;;  %v856_v47 = vunpack.c.l.bf16 %v942_v33  ;;  %v884_v48 = vunpack.c.l.bf16 %v949_v34  ;;  %v917_v49 = vunpack.c.h.bf16 %v957_v41  ;;  %v803_v31 = vld [vmem:[%s1265_s19] sm:$0xff]  }
  0x46   : > { %359 = vmatpush.msra.mxu0 %v308_v3  ;;  %621 = vmatpush.msrb.mxu2 %v897_v4  ;;  %v821_v50 = vunpack.c.h.bf16 %v933_v42  ;;  %v853_v51 = vunpack.c.h.bf16 %v941_v45  ;;  %v881_v52 = vunpack.c.h.bf16 %v948_v46  ;;  %v916_v55 = vunpack.c.l.bf16 %v957_v41  ;;  %v291_v41 = vld [vmem:[%s1237_s9 + $0x58] sm:$0xff] }
  0x47   : > { %382 = vmatpush.msra.mxu1 %v309_v5  ;;  %644 = vmatpush.msrb.mxu3 %v929_v6  ;;  %v820_v56 = vunpack.c.l.bf16 %v933_v42  ;;  %v852_v59 = vunpack.c.l.bf16 %v941_v45  ;;  %v880_v60 = vunpack.c.l.bf16 %v948_v46  ;;  %v913_v61 = vunpack.c.h.bf16 %v956_v53  ;;  %v939_v5 = vld [vmem:[%s1265_s19 + $0x50] sm:$0xff]   ;;  %v946_v6 = vld [vmem:[%s1265_s19 + $0x88] sm:$0xff]  }
  0x48   : > { %360 = vmatpush.msra.mxu0 %v304_v8  ;;  %622 = vmatpush.msrb.mxu2 %v896_v9  ;;  %v817_v62 = vunpack.c.h.bf16 %v932_v54  ;;  %v849_v63 = vunpack.c.h.bf16 %v940_v57  ;;  %v877_v0 = vunpack.c.h.bf16 %v947_v58  ;;  %v912_v3 = vunpack.c.l.bf16 %v956_v53  ;;  %v295_v53 = vld [vmem:[%s1237_s9 + $0x78] sm:$0xff] }
  0x49   : > { %383 = vmatpush.msra.mxu1 %v305_v12  ;;  %787 = vmatmul.msk.f32.vlgmr.msra.gmra.mxu0 %vm338_vm0, %v336_v1  ;;  %v816_v4 = vunpack.c.l.bf16 %v932_v54  ;;  %v848_v7 = vunpack.c.l.bf16 %v940_v57  ;;  %v876_v8 = vunpack.c.l.bf16 %v947_v58  ;;  %v813_v10 = vunpack.c.h.bf16 %v931_v2 }
  0x4a   : > { %789 = vmatmul.msk.f32.vlgmr.msra.gmra.mxu1 %vm338_vm0, %v336_v1  ;;  %575 = vmatpush.msrb.mxu0 %v833_v13  ;;  %v955_v1 = vld [vmem:[%s1265_s19 + $0xd0] sm:$0xff]   ;;  %v845_v11 = vunpack.c.h.bf16 %v939_v5  ;;  %v873_v12 = vunpack.c.h.bf16 %v946_v6  ;;  %v954_v13 = vld [vmem:[%s1265_s19 + $0xc8] sm:$0xff]   ;;  %v872_v17 = vunpack.c.l.bf16 %v946_v6  ;;  %v805_v33 = vunpack.c.h.bf16 %v803_v31 }
  0x4b   : > { %598 = vmatpush.msrb.mxu1 %v865_v14  ;;  %623 = vmatpush.msrb.mxu2 %v893_v15  ;;  %v909_v9 = vunpack.c.h.bf16 %v955_v1  ;;  %v908_v14 = vunpack.c.l.bf16 %v955_v1  ;;  %v812_v15 = vunpack.c.l.bf16 %v931_v2  ;;  %v905_v18 = vunpack.c.h.bf16 %v954_v13 }
  0x4c   : > { %645 = vmatpush.msrb.mxu3 %v928_v16  ;;  %576 = vmatpush.msrb.mxu0 %v832_v20  ;;  %v844_v16 = vunpack.c.l.bf16 %v939_v5  ;;  %v938_v20 = vld [vmem:[%s1265_s19 + $0x48] sm:$0xff]   ;;  %vm277_vm1 = vcmask 130048  }
  0x4d   : > { %792 = vmatmul.msk.f32.gmra.mxu2 %vm338_vm0, %v337_v19  ;;  %794 = vmatmul.msk.f32.gmra.mxu3 %vm338_vm0, %v337_v19 }
  0x4e   : > { %599 = vmatpush.msrb.mxu1 %v864_v23  ;;  %624 = vmatpush.msrb.mxu2 %v892_v24  ;;  %v841_v23 = vunpack.c.h.bf16 %v938_v20  ;;  %v869_v24 = vunpack.c.h.bf16 %v945_v21 }
  0x4f   : > { %646 = vmatpush.msrb.mxu3 %v925_v25  ;;  %577 = vmatpush.msrb.mxu0 %v829_v26  ;;  %v904_v25 = vunpack.c.l.bf16 %v954_v13  ;;  %v953_v26 = vld [vmem:[%s1265_s19 + $0xc0] sm:$0xff]  }
  0x50   : > { %600 = vmatpush.msrb.mxu1 %v861_v27  ;;  %625 = vmatpush.msrb.mxu2 %v889_v28  ;;  %v840_v28 = vunpack.c.l.bf16 %v938_v20  ;;  %v901_v30 = vunpack.c.h.bf16 %v953_v26 }
  0x51   : > { %788 = vmatmul.msk.f32.gmra.mxu0 %vm338_vm0, %v337_v19  ;;  %647 = vmatpush.msrb.mxu3 %v924_v29  ;;  %v868_v29 = vunpack.c.l.bf16 %v945_v21 }
  0x52   : > { %790 = vmatmul.msk.f32.gmra.mxu1 %vm338_vm0, %v337_v19  ;;  %578 = vmatpush.msrb.mxu0 %v828_v32  ;;  %v930_v19 = vld [vmem:[%s1265_s19 + $0x8] sm:$0xff]   ;;  %v937_v32 = vld [vmem:[%s1265_s19 + $0x40] sm:$0xff]  }
  0x53   : > { %601 = vmatpush.msrb.mxu1 %v860_v35  ;;  %626 = vmatpush.msrb.mxu2 %v888_v36  ;;  %v809_v22 = vunpack.c.h.bf16 %v930_v19  ;;  %v808_v27 = vunpack.c.l.bf16 %v930_v19  ;;  %v837_v34 = vunpack.c.h.bf16 %v937_v32  ;;  %v900_v35 = vunpack.c.l.bf16 %v953_v26 }
  0x54   : > { %648 = vmatpush.msrb.mxu3 %v921_v37  ;;  %579 = vmatpush.msrb.mxu0 %v825_v38  ;;  %v804_v36 = vunpack.c.l.bf16 %v803_v31  ;;  %v836_v37 = vunpack.c.l.bf16 %v937_v32  ;;  %v288_v38 = vld [vmem:[%s1237_s9 + $0x40] sm:$0xff] }
  0x55   : > { %602 = vmatpush.msrb.mxu1 %v857_v39  ;;  %627 = vmatpush.msrb.mxu2 %v885_v40  ;;  %v290_v39 = vld [vmem:[%s1237_s9 + $0x50] sm:$0xff]  ;;  %v289_v40 = vld [vmem:[%s1237_s9 + $0x48] sm:$0xff] }
  0x56   : > { %649 = vmatpush.msrb.mxu3 %v920_v43  ;;  %580 = vmatpush.msrb.mxu0 %v824_v44 }
  0x57   : > { %603 = vmatpush.msrb.mxu1 %v856_v47  ;;  %628 = vmatpush.msrb.mxu2 %v884_v48 }
  0x58   : > { %650 = vmatpush.msrb.mxu3 %v917_v49  ;;  %581 = vmatpush.msrb.mxu0 %v821_v50  ;;  %v292_v50 = vld [vmem:[%s1237_s9 + $0x60] sm:$0xff] }
  0x59   : > { %604 = vmatpush.msrb.mxu1 %v853_v51  ;;  %629 = vmatpush.msrb.mxu2 %v881_v52  ;;  %v294_v51 = vld [vmem:[%s1237_s9 + $0x70] sm:$0xff]  ;;  %v293_v52 = vld [vmem:[%s1237_s9 + $0x68] sm:$0xff]  ;;  %s687_s9 = sshll.u32 %s684_s7, 4  ;;  %s688_s9 = int_to_ptr.hbm [resolvable:$true] %s687_s9 }
  0x5a   : > { %651 = vmatpush.msrb.mxu3 %v916_v55  ;;  %582 = vmatpush.msrb.mxu0 %v820_v56  ;;  %s1035_s10 = sshra.s32 %s688_s9, 4  ;;  %s1036_s10 = int_to_ptr.hbm [resolvable:$true] %s1035_s10 }
  0x5b   : > { %605 = vmatpush.msrb.mxu1 %v852_v59  ;;  %630 = vmatpush.msrb.mxu2 %v880_v60  ;;  %s1037_s11 = scalar_lea.hbm %s1036_s10, 16  ;;  %p1042_p4 = scmp.lt.s32.totalorder %s1036_s10, %s1369_s3 }
  0x5c   : > { %652 = vmatpush.msrb.mxu3 %v913_v61  ;;  %583 = vmatpush.msrb.mxu0 %v817_v62  ;;  %v1101_v62 = vmov 0.0   ;;  %p1038_p1 = scmp.ne.s32.totalorder %s1036_s10, %s1037_s11  ;;  %p1043_p6 = scmp.lt.s32.totalorder %s1041_s21, %s1037_s11 }
  0x5d   : > { %606 = vmatpush.msrb.mxu1 %v849_v63  ;;  %631 = vmatpush.msrb.mxu2 %v877_v0  ;;  %278 = vst.msk [vmem:[%s262_s29] sm:$0xff] %vm277_vm1, %v1101_v62 }
  0x5e   : > { %653 = vmatpush.msrb.mxu3 %v912_v3  ;;  %584 = vmatpush.msrb.mxu0 %v816_v4  ;;  %279 = vst.msk [vmem:[%s262_s29 + $0x8] sm:$0xff] %vm277_vm1, %v1101_v62  ;;  %p1039_p2 = pnand %p1038_p1, %p1163_p5  ;;  %p1044_p7 = por %p1043_p6, %p1042_p4 }
  0x5f   : > { %607 = vmatpush.msrb.mxu1 %v848_v7  ;;  %632 = vmatpush.msrb.mxu2 %v876_v8 }
  0x60   : > { %654 = vmatpush.msrb.mxu3 %v909_v9  ;;  %585 = vmatpush.msrb.mxu0 %v813_v10  ;;  %p1040_p3 = pneg %p1039_p2 }
  0x61   : > { %608 = vmatpush.msrb.mxu1 %v845_v11  ;;  %633 = vmatpush.msrb.mxu2 %v873_v12 }
  0x62   : > { %655 = vmatpush.msrb.mxu3 %v908_v14  ;;  %586 = vmatpush.msrb.mxu0 %v812_v15  ;;  %p1045_p8 = pnand %p1044_p7, %p1040_p3 }
  0x63   : > { %609 = vmatpush.msrb.mxu1 %v844_v16  ;;  %634 = vmatpush.msrb.mxu2 %v872_v17 }
  0x64   : > { %656 = vmatpush.msrb.mxu3 %v905_v18  ;;  %587 = vmatpush.msrb.mxu0 %v809_v22  ;;  %v573_v5 = vld [vmem:[%s262_s29] sm:$0xff] }
  0x65   : > { %610 = vmatpush.msrb.mxu1 %v841_v23  ;;  %635 = vmatpush.msrb.mxu2 %v869_v24  ;;  %v574_v14 = vld [vmem:[%s262_s29 + $0x8] sm:$0xff] }
  0x66   : > { %657 = vmatpush.msrb.mxu3 %v904_v25  ;;  %588 = vmatpush.msrb.mxu0 %v808_v27 }
  0x67   : > { %611 = vmatpush.msrb.mxu1 %v840_v28  ;;  %636 = vmatpush.msrb.mxu2 %v868_v29 }
  0x68   : > { %658 = vmatpush.msrb.mxu3 %v901_v30  ;;  %589 = vmatpush.msrb.mxu0 %v805_v33 }
  0x69   : > { %612 = vmatpush.msrb.mxu1 %v837_v34 }
  0x6a   : > { %659 = vmatpush.msrb.mxu3 %v900_v35  ;;  %590 = vmatpush.msrb.mxu0 %v804_v36 }
  0x6b   : > { %613 = vmatpush.msrb.mxu1 %v836_v37 }
  0xc6   : > { %v362_v42 = vpop.f32.mrf.mxu0 }
  0xc7   : > { %v437_v44 = vmul.f32 %v362_v42, %v288_v38  ;;  %v385_v45 = vpop.f32.mrf.mxu1 }
  0xc8   : > { %v408_v43 = vpop.f32.mrf.mxu2  ;;  %v431_v47 = vpop.f32.mrf.mxu3  ;;  %v438_v48 = vmul.f32 %v385_v45, %v289_v40 }
  0xc9   : > { %v439_v46 = vmul.f32 %v408_v43, %v290_v39  ;;  %v440_v49 = vmul.f32 %v431_v47, %v291_v41  ;;  %591 = vmatmul.f32.vlgmr.msrb.gmra.mxu0 %v437_v44 }
  0xca   : > { %614 = vmatmul.f32.vlgmr.msrb.gmra.mxu1 %v438_v48 }
  0xcb   : > { %637 = vmatmul.f32.vlgmr.msrb.gmra.mxu2 %v439_v46  ;;  %660 = vmatmul.f32.vlgmr.msrb.gmra.mxu3 %v440_v49 }
  0xce   : > { %v365_v54 = vpop.f32.mrf.mxu0 }
  0xcf   : > { %v441_v56 = vmul.f32 %v365_v54, %v292_v50  ;;  %v388_v57 = vpop.f32.mrf.mxu1 }
  0xd0   : > { %v411_v55 = vpop.f32.mrf.mxu2  ;;  %v434_v59 = vpop.f32.mrf.mxu3  ;;  %v442_v60 = vmul.f32 %v388_v57, %v293_v52 }
  0xd1   : > { %v443_v58 = vmul.f32 %v411_v55, %v294_v51  ;;  %v444_v61 = vmul.f32 %v434_v59, %v295_v53  ;;  %594 = vmatmul.f32.gmra.mxu0 %v441_v56 }
  0xd2   : > { %617 = vmatmul.f32.gmra.mxu1 %v442_v60 }
  0xd3   : > { %640 = vmatmul.f32.gmra.mxu2 %v443_v58  ;;  %663 = vmatmul.f32.gmra.mxu3 %v444_v61 }
 0x146   : > { %v592_v63 = vpop.f32.mrf.mxu0 }
 0x147   : > { %v615_v0 = vpop.f32.mrf.mxu1 }
 0x148   : > { %v616_v1 = vadd.f32 %v615_v0, %v592_v63 }
 0x14e   : > { %v638_v2 = vpop.f32.mrf.mxu2  ;;  %v661_v4 = vpop.f32.mrf.mxu3 }
 0x14f   : > { %v639_v3 = vadd.f32 %v638_v2, %v616_v1  ;;  %v595_v6 = vpop.f32.mrf.mxu0  ;;  %v618_v7 = vpop.f32.mrf.mxu1 }
 0x150   : > { %v619_v10 = vadd.f32 %v618_v7, %v595_v6 }
 0x151   : > { %v662_v8 = vadd.f32 %v661_v4, %v639_v3 }
 0x153   : > { %v667_v9 = vadd.f32 %v662_v8, %v573_v5 }
 0x155   : > { %670 = vst.msk [vmem:[%s262_s29] sm:$0xff] %vm277_vm1, %v667_v9 }
 0x156   : > { %v641_v11 = vpop.f32.mrf.mxu2  ;;  %v664_v13 = vpop.f32.mrf.mxu3 }
 0x157   : > { %v642_v12 = vadd.f32 %v641_v11, %v619_v10 }
 0x159   : > { %v665_v15 = vadd.f32 %v664_v13, %v642_v12 }
 0x15b   : > { %v668_v16 = vadd.f32 %v665_v15, %v574_v14 }
 0x15d   : > { %671 = vst.msk [vmem:[%s262_s29 + $0x8] sm:$0xff] %vm277_vm1, %v668_v16 }
 0x15e   : > { %1048 = shalt.err (!%p1045_p8)
}
 0x15f   : > { %s1102_s6 = smov 128   ;;  %s1103_s27 = smov 8  }
 0x160   : > { %963 = dma.vmem_to_hbm [thread:$0]  (%p1163_p5), %s686_s8, 256, %s688_s9, %s673_s15, %s1102_s6, %s1102_s6, %s1103_s27  }
 0x161 PF: > { %s702_s28 = sand.u32 1, %s1079_s12   ;;  %p966_p11 = pnand %p780_p10, %p1174_p9 }
 0x162   : > { %s703_s29 = scalar_lea.sflag [#allocation4], %s702_s28 }
 0x163   : > { %p967_p12 = pneg %p966_p11 }
 0x165   : > { %1074 = dma.done.wait (%p967_p12), %s703_s29, 256  }
 0x166   : > { %1076 = vsyncadd (%p967_p12), %s703_s29, 4294967040  ;;  %s16_s17 = sadd.s32 1, %s1099_s17   ;;  %s1372_s12 = smov %s1083_s13 }
 0x167   : > { %p13_p13 = scmp.ge.s32.totalorder %s16_s17, 4   ;;  %s1373_s13 = smov %s1087_s14 }
 0x168   : > { %s1374_s14 = smov %s1172_s24  ;;  %s1375_s15 = smov %s1095_s16 }
 0x169   : > { %s1376_s16 = smov %s1378_s20  ;;  %15 = sbr.rel (!%p13_p13) target bundleno = 4 (0x4), region = 102 }
 0x16e   :  { %709 = vsyncpa [#allocation4], 1 }
 0x16f   :  { %711 = vsyncpa [#allocation4 + $0x1], 1 }

</bundles_post_ra>
